<compile_context>
chip_gen: v7x
topology: tpu7x:2x2x1
jax: 0.10.0
libtpu: 0.0.40
codegen_flags: <defaults>
</compile_context>

<pallas_src>
import jax
import jax.numpy as jnp
from jax.experimental import pallas as pl
from jax.experimental.pallas import tpu as pltpu

H1 = 256  # l1 output features
H2 = 64   # l2 output features


def _round_up(x, m):
    return ((x + m - 1) // m) * m


def _num_tensorcores():
    """Best-effort TensorCore count (2 on v7x, 1 on v5e/v6e); falls back to 1."""
    try:
        info = pltpu.get_tpu_info()
        for attr in ("num_cores", "core_count", "num_tensor_cores", "num_tensorcores"):
            n = getattr(info, attr, None)
            if n:
                return int(n)
    except Exception:
        pass
    return 1


def encoder_kernel(x_ref, w1_ref, b1_ref, w2_ref, b2_ref, w3_ref, b3_ref, o_ref):
    x = x_ref[...]
    # l1: Linear(in, 256) -> tanh
    h1 = jnp.tanh(
        jnp.dot(x, w1_ref[...], preferred_element_type=jnp.float32) + b1_ref[...]
    )
    # l2: Linear(256, 64) -> relu
    h2 = jnp.maximum(
        jnp.dot(h1, w2_ref[...], preferred_element_type=jnp.float32) + b2_ref[...],
        0.0,
    )
    # l3: Linear(64, out) -> tanh
    o_ref[...] = jnp.tanh(
        jnp.dot(h2, w3_ref[...], preferred_element_type=jnp.float32) + b3_ref[...]
    )


def encoder_forward(x, params, *, tm=1024):
    """Runs the 3-layer MLP encoder as a single fused Pallas kernel.

    x: (B, in_features) float32.  The grid tiles the batch dimension; all weights
    (<170 KB) stay VMEM-resident (constant block index) for every grid step.
    """
    w1, b1, w2, b2, w3, b3 = params
    B, in_f = x.shape
    h1, h2 = w1.shape[1], w2.shape[1]
    out_f = w3.shape[1]

    # ---- Batch tile: multiple of 8 sublanes, never larger than the rounded batch.
    tm = max(8, (tm // 8) * 8)
    tm = min(tm, _round_up(B, 8))

    # ---- v7x only (2 TensorCores): balance the grid length to a multiple of the
    # core count so the "parallel" batch axis keeps both cores busy.  On single
    # core v5e/v6e this block is a no-op (no tile split, no extra grid steps).
    ncores = _num_tensorcores()
    if ncores > 1 and B > tm:
        n_tiles = _round_up(pl.cdiv(B, tm), ncores)
        tm = min(tm, _round_up(pl.cdiv(B, n_tiles), 8))

    # No jnp.pad of x: Pallas masks the partial last block at the grid edge.
    grid = (pl.cdiv(B, tm),)

    # ---- Advisory cost estimate for the XLA scheduler.
    flops = 2 * B * (in_f * h1 + h1 * h2 + h2 * out_f)
    transcendentals = B * (h1 + out_f)  # tanh count (relu is not transcendental)
    bytes_accessed = 4 * (
        B * in_f + B * out_f + in_f * h1 + h1 + h1 * h2 + h2 + h2 * out_f + out_f
    )
    cost = pl.CostEstimate(
        flops=flops, transcendentals=transcendentals, bytes_accessed=bytes_accessed
    )

    # Weight / bias blocks cover the full arrays (constant block indices -> the
    # pipeline re-uses the resident VMEM copy across all grid steps).
    def full(arr):
        return pl.BlockSpec(arr.shape, lambda i, _nd=arr.ndim: (0,) * _nd)

    out = pl.pallas_call(
        encoder_kernel,
        out_shape=jax.ShapeDtypeStruct((B, out_f), jnp.float32),
        grid_spec=pltpu.PrefetchScalarGridSpec(
            num_scalar_prefetch=0,
            grid=grid,
            in_specs=[
                pl.BlockSpec((tm, in_f), lambda i: (i, 0)),
                full(w1), full(b1),
                full(w2), full(b2),
                full(w3), full(b3),
            ],
            out_specs=pl.BlockSpec((tm, out_f), lambda i: (i, 0)),
        ),
        compiler_params=pltpu.CompilerParams(
            dimension_semantics=("parallel",),
        ),
        cost_estimate=cost,
    )(x, w1, b1, w2, b2, w3, b3)
    return out


def init_params(key, in_features, out_features):
    """Deterministic synthetic parameters (PyTorch nn.Linear shapes, pre-transposed)."""
    ks = jax.random.split(key, 6)
    scale = lambda fan_in: 1.0 / jnp.sqrt(jnp.float32(fan_in))
    w1 = jax.random.uniform(ks[0], (in_features, H1), jnp.float32, -1, 1) * scale(in_features)
    b1 = jax.random.uniform(ks[1], (1, H1), jnp.float32, -1, 1) * scale(in_features)
    w2 = jax.random.uniform(ks[2], (H1, H2), jnp.float32, -1, 1) * scale(H1)
    b2 = jax.random.uniform(ks[3], (1, H2), jnp.float32, -1, 1) * scale(H1)
    w3 = jax.random.uniform(ks[4], (H2, out_features), jnp.float32, -1, 1) * scale(H2)
    b3 = jax.random.uniform(ks[5], (1, out_features), jnp.float32, -1, 1) * scale(H2)
    return (w1, b1, w2, b2, w3, b3)


def encoder_reference(x, params):
    w1, b1, w2, b2, w3, b3 = params
    h = jnp.tanh(x @ w1 + b1)
    h = jax.nn.relu(h @ w2 + b2)
    return jnp.tanh(h @ w3 + b3)


if __name__ == "__main__":
    in_features = 32
    out_features = 16
    batch = 128

    key = jax.random.PRNGKey(0)
    kx, kp = jax.random.split(key)
    x = jax.random.normal(kx, (batch, in_features), dtype=jnp.float32)
    params = init_params(kp, in_features, out_features)

    # Main run (single tile at the default tm).
    out = jax.block_until_ready(encoder_forward(x, params))
    ref = encoder_reference(x, params)
    assert out.shape == (batch, out_features)
    assert jnp.allclose(out, ref, atol=1e-5, rtol=1e-5)

    # Ragged-batch path: non-divisible batch exercises the masked partial last block.
    x2 = jax.random.normal(jax.random.PRNGKey(1), (100, in_features), dtype=jnp.float32)
    out2 = jax.block_until_ready(encoder_forward(x2, params, tm=64))
    ref2 = encoder_reference(x2, params)
    assert out2.shape == (100, out_features)
    assert jnp.allclose(out2, ref2, atol=1e-5, rtol=1e-5)

    print("KERNEL_OK")
</pallas_src>

<mosaic_0001>
module attributes {stable_mosaic.version = 11 : i64} {
  func.func @encoder_kernel(%arg0: i32, %arg1: memref<128x32xf32, #tpu.memory_space<vmem>>, %arg2: memref<32x256xf32, #tpu.memory_space<vmem>>, %arg3: memref<1x256xf32, #tpu.memory_space<vmem>>, %arg4: memref<256x64xf32, #tpu.memory_space<vmem>>, %arg5: memref<1x64xf32, #tpu.memory_space<vmem>>, %arg6: memref<64x16xf32, #tpu.memory_space<vmem>>, %arg7: memref<1x16xf32, #tpu.memory_space<vmem>>, %arg8: memref<128x16xf32, #tpu.memory_space<vmem>>) attributes {dimension_semantics = [#tpu.dimension_semantics<parallel>], iteration_bounds = array<i64: 1>, scalar_prefetch = 0 : i64, scratch_operands = 0 : i64, tpu.core_type = #tpu.core_type<tc>, window_params = [{transform_indices = @transform_0, window_bounds = array<i64: 128, 32>}, {pipeline_mode = #tpu.pipeline_mode<synchronous>, transform_indices = @transform_1, window_bounds = array<i64: 32, 256>}, {pipeline_mode = #tpu.pipeline_mode<synchronous>, transform_indices = @transform_2, window_bounds = array<i64: 1, 256>}, {pipeline_mode = #tpu.pipeline_mode<synchronous>, transform_indices = @transform_3, window_bounds = array<i64: 256, 64>}, {pipeline_mode = #tpu.pipeline_mode<synchronous>, transform_indices = @transform_4, window_bounds = array<i64: 1, 64>}, {pipeline_mode = #tpu.pipeline_mode<synchronous>, transform_indices = @transform_5, window_bounds = array<i64: 64, 16>}, {pipeline_mode = #tpu.pipeline_mode<synchronous>, transform_indices = @transform_6, window_bounds = array<i64: 1, 16>}, {transform_indices = @transform_7, window_bounds = array<i64: 128, 16>}]} {
    %c0 = arith.constant 0 : index
    %c0_0 = arith.constant 0 : index
    %0 = vector.load %arg1[%c0, %c0_0] : memref<128x32xf32, #tpu.memory_space<vmem>>, vector<128x32xf32>
    %c0_1 = arith.constant 0 : index
    %c0_2 = arith.constant 0 : index
    %1 = vector.load %arg2[%c0_1, %c0_2] : memref<32x256xf32, #tpu.memory_space<vmem>>, vector<32x256xf32>
    %cst = arith.constant dense<0.000000e+00> : vector<128x256xf32>
    %2 = tpu.matmul %0, %1, %cst {dimension_numbers = #tpu.dot_dimension_numbers<[1], [0], [0], [1], [0, 0, 1, 1], [], []>} : vector<128x32xf32>, vector<32x256xf32>, vector<128x256xf32> -> vector<128x256xf32>
    %c0_3 = arith.constant 0 : index
    %c0_4 = arith.constant 0 : index
    %3 = vector.load %arg3[%c0_3, %c0_4] : memref<1x256xf32, #tpu.memory_space<vmem>>, vector<1x256xf32>
    %4 = vector.broadcast %3 : vector<1x256xf32> to vector<128x256xf32>
    %5 = arith.addf %2, %4 : vector<128x256xf32>
    %6 = math.tanh %5 : vector<128x256xf32>
    %c0_5 = arith.constant 0 : index
    %c0_6 = arith.constant 0 : index
    %7 = vector.load %arg4[%c0_5, %c0_6] : memref<256x64xf32, #tpu.memory_space<vmem>>, vector<256x64xf32>
    %cst_7 = arith.constant dense<0.000000e+00> : vector<128x64xf32>
    %8 = tpu.matmul %6, %7, %cst_7 {dimension_numbers = #tpu.dot_dimension_numbers<[1], [0], [0], [1], [0, 0, 1, 1], [], []>} : vector<128x256xf32>, vector<256x64xf32>, vector<128x64xf32> -> vector<128x64xf32>
    %c0_8 = arith.constant 0 : index
    %c0_9 = arith.constant 0 : index
    %9 = vector.load %arg5[%c0_8, %c0_9] : memref<1x64xf32, #tpu.memory_space<vmem>>, vector<1x64xf32>
    %10 = vector.broadcast %9 : vector<1x64xf32> to vector<128x64xf32>
    %11 = arith.addf %8, %10 : vector<128x64xf32>
    %cst_10 = arith.constant 0.000000e+00 : f32
    %12 = vector.broadcast %cst_10 : f32 to vector<128x64xf32>
    %13 = arith.maximumf %11, %12 : vector<128x64xf32>
    %c0_11 = arith.constant 0 : index
    %c0_12 = arith.constant 0 : index
    %14 = vector.load %arg6[%c0_11, %c0_12] : memref<64x16xf32, #tpu.memory_space<vmem>>, vector<64x16xf32>
    %cst_13 = arith.constant dense<0.000000e+00> : vector<128x16xf32>
    %15 = tpu.matmul %13, %14, %cst_13 {dimension_numbers = #tpu.dot_dimension_numbers<[1], [0], [0], [1], [0, 0, 1, 1], [], []>} : vector<128x64xf32>, vector<64x16xf32>, vector<128x16xf32> -> vector<128x16xf32>
    %c0_14 = arith.constant 0 : index
    %c0_15 = arith.constant 0 : index
    %16 = vector.load %arg7[%c0_14, %c0_15] : memref<1x16xf32, #tpu.memory_space<vmem>>, vector<1x16xf32>
    %17 = vector.broadcast %16 : vector<1x16xf32> to vector<128x16xf32>
    %18 = arith.addf %15, %17 : vector<128x16xf32>
    %19 = math.tanh %18 : vector<128x16xf32>
    %c0_16 = arith.constant 0 : index
    %c0_17 = arith.constant 0 : index
    %20 = vector.load %arg8[%c0_16, %c0_17] : memref<128x16xf32, #tpu.memory_space<vmem>>, vector<128x16xf32>
    tpu.vector_store %arg8[%c0_16, %c0_17], %19 {strides = array<i32>} : memref<128x16xf32, #tpu.memory_space<vmem>>, vector<128x16xf32>,
    return
  }
  func.func @transform_0(%arg0: i32) -> (i32, i32) {
    %c0_i32 = arith.constant 0 : i32
    %c0_i32_0 = arith.constant 0 : i32
    return %arg0, %c0_i32 : i32, i32
  }
  func.func @transform_1(%arg0: i32) -> (i32, i32) {
    %c0_i32 = arith.constant 0 : i32
    %c0_i32_0 = arith.constant 0 : i32
    %c0_i32_1 = arith.constant 0 : i32
    return %c0_i32, %c0_i32_0 : i32, i32
  }
  func.func @transform_2(%arg0: i32) -> (i32, i32) {
    %c0_i32 = arith.constant 0 : i32
    %c0_i32_0 = arith.constant 0 : i32
    %c0_i32_1 = arith.constant 0 : i32
    return %c0_i32, %c0_i32_0 : i32, i32
  }
  func.func @transform_3(%arg0: i32) -> (i32, i32) {
    %c0_i32 = arith.constant 0 : i32
    %c0_i32_0 = arith.constant 0 : i32
    %c0_i32_1 = arith.constant 0 : i32
    return %c0_i32, %c0_i32_0 : i32, i32
  }
  func.func @transform_4(%arg0: i32) -> (i32, i32) {
    %c0_i32 = arith.constant 0 : i32
    %c0_i32_0 = arith.constant 0 : i32
    %c0_i32_1 = arith.constant 0 : i32
    return %c0_i32, %c0_i32_0 : i32, i32
  }
  func.func @transform_5(%arg0: i32) -> (i32, i32) {
    %c0_i32 = arith.constant 0 : i32
    %c0_i32_0 = arith.constant 0 : i32
    %c0_i32_1 = arith.constant 0 : i32
    return %c0_i32, %c0_i32_0 : i32, i32
  }
  func.func @transform_6(%arg0: i32) -> (i32, i32) {
    %c0_i32 = arith.constant 0 : i32
    %c0_i32_0 = arith.constant 0 : i32
    %c0_i32_1 = arith.constant 0 : i32
    return %c0_i32, %c0_i32_0 : i32, i32
  }
  func.func @transform_7(%arg0: i32) -> (i32, i32) {
    %c0_i32 = arith.constant 0 : i32
    %c0_i32_0 = arith.constant 0 : i32
    return %arg0, %c0_i32 : i32, i32
  }
}

</mosaic_0001>

<bundles_post_ra>
// kernel: tpu_custom_call.1
= control target key start
LH: loop header
LB: loop body
LE: loop exit
PB: predicated region body
PF: predicated region fallthrough
CT: control target
= control target key end

     0   :  { %v1089_v3 = vmov 0.0   ;;  %vm62_vm0 = vcmask 261120   ;;  %vm519_vm1 = vcmask 523264   ;;  %vm729_vm2 = vcmask 130048   ;;  %s1515_s1 = inlined_call_operand.vmem [shape: f32[32,256], index: 1, kind: input, shape index: {}]   ;;  %s1516_s0 = inlined_call_operand.vmem [shape: f32[128,32], index: 0, kind: input, shape index: {}]   ;;  %s1517_s3 = inlined_call_operand.vmem [shape: f32[256,64], index: 3, kind: input, shape index: {}]   ;;  %s1518_s5 = inlined_call_operand.vmem [shape: f32[64,16], index: 5, kind: input, shape index: {}]   ;;  %s1519_s2 = inlined_call_operand.vmem [shape: f32[1,256], index: 2, kind: input, shape index: {}]   ;;  %s1520_s4 = inlined_call_operand.vmem [shape: f32[1,64], index: 4, kind: input, shape index: {}]   ;;  %s1521_s6 = inlined_call_operand.vmem [shape: f32[1,16], index: 6, kind: input, shape index: {}]   ;;  %s1522_s7 = inlined_call_operand.vmem [shape: f32[128,16], index: 7, kind: output, shape index: {}]  }
   0x1   :  { %v43_v0 = vld [vmem:[%s1515_s1 + $0x8] sm:$0xff]  ;;  %v45_v1 = vld [vmem:[%s1515_s1 + $0x18] sm:$0xff]  ;;  %v42_v2 = vld [vmem:[%s1515_s1] sm:$0xff]  ;;  %175 = vmatprep.mubr.f32.mxu0 %v1089_v3 }
   0x2   :  { %v928_v4 = vpack.c.bf16 %v45_v1, %v43_v0  ;;  %v44_v5 = vld [vmem:[%s1515_s1 + $0x10] sm:$0xff]  ;;  %v47_v6 = vld [vmem:[%s1515_s1 + $0x28] sm:$0xff]  ;;  %v49_v7 = vld [vmem:[%s1515_s1 + $0x38] sm:$0xff] }
   0x3   :  { %v930_v8 = vpack.c.bf16 %v44_v5, %v42_v2  ;;  %v932_v9 = vpack.c.bf16 %v49_v7, %v47_v6  ;;  %v46_v10 = vld [vmem:[%s1515_s1 + $0x20] sm:$0xff]  ;;  %v48_v11 = vld [vmem:[%s1515_s1 + $0x30] sm:$0xff]  ;;  %v321_v15 = vld [vmem:[%s1517_s3 + $0x88] sm:$0xff] }
   0x4   :  { %929 = vmatprep.subr.bf16.mxu0 %v928_v4  ;;  %v934_v12 = vpack.c.bf16 %v48_v11, %v46_v10  ;;  %v26_v13 = vld [vmem:[%s1516_s0] sm:$0xff]  ;;  %v305_v18 = vld [vmem:[%s1517_s3 + $0x8] sm:$0xff]  ;;  %v322_v19 = vld [vmem:[%s1517_s3 + $0x90] sm:$0xff] }
   0x5   :  { %931 = vmatpush1.bf16.msra.mxu0 %v930_v8  ;;  %v320_v14 = vld [vmem:[%s1517_s3 + $0x80] sm:$0xff]  ;;  %v323_v20 = vld [vmem:[%s1517_s3 + $0x98] sm:$0xff]  ;;  %v306_v23 = vld [vmem:[%s1517_s3 + $0x10] sm:$0xff] }
   0x6   :  { %933 = vmatprep.subr.bf16.mxu0 %v932_v9  ;;  %v304_v16 = vld [vmem:[%s1517_s3] sm:$0xff]  ;;  %v936_v17 = vpack.c.bf16 %v321_v15, %v320_v14  ;;  %v940_v22 = vpack.c.bf16 %v323_v20, %v322_v19  ;;  %v307_v24 = vld [vmem:[%s1517_s3 + $0x18] sm:$0xff]  ;;  %v325_v26 = vld [vmem:[%s1517_s3 + $0xa8] sm:$0xff]  ;;  %v52_v19 = vlaneseq }
   0x7   :  { %v938_v21 = vpack.c.bf16 %v305_v18, %v304_v16  ;;  %v324_v25 = vld [vmem:[%s1517_s3 + $0xa0] sm:$0xff]  ;;  %v27_v27 = vld [vmem:[%s1516_s0 + $0x8] sm:$0xff]  ;;  %v942_v28 = vpack.c.bf16 %v307_v24, %v306_v23  ;;  %v326_v32 = vld [vmem:[%s1517_s3 + $0xb0] sm:$0xff] }
   0x8   :  { %937 = vmatprep.subr.bf16.mxu1 %v936_v17  ;;  %v944_v29 = vpack.c.bf16 %v325_v26, %v324_v25  ;;  %v308_v30 = vld [vmem:[%s1517_s3 + $0x20] sm:$0xff]  ;;  %v309_v31 = vld [vmem:[%s1517_s3 + $0x28] sm:$0xff]  ;;  %v327_v33 = vld [vmem:[%s1517_s3 + $0xb8] sm:$0xff]  ;;  %v53_v20 = vshrl.u32 %v52_v19, 7 }
   0x9   :  { %935 = vmatpush1.bf16.msra.mxu0 %v934_v12  ;;  %939 = vmatpush3.bf16.msra.mxu1 %v938_v21  ;;  %v28_v34 = vld [vmem:[%s1516_s0 + $0x10] sm:$0xff]  ;;  %v946_v35 = vpack.c.bf16 %v309_v31, %v308_v30  ;;  %v948_v36 = vpack.c.bf16 %v327_v33, %v326_v32  ;;  %v311_v38 = vld [vmem:[%s1517_s3 + $0x38] sm:$0xff]  ;;  %v30_v41 = vld [vmem:[%s1516_s0 + $0x20] sm:$0xff] }
   0xa   :  { %941 = vmatprep.subr.bf16.mxu1 %v940_v22  ;;  %v310_v37 = vld [vmem:[%s1517_s3 + $0x30] sm:$0xff]  ;;  %v29_v39 = vld [vmem:[%s1516_s0 + $0x18] sm:$0xff]  ;;  %v31_v42 = vld [vmem:[%s1516_s0 + $0x28] sm:$0xff]  ;;  %v54_v21 = vsub.s32 0, %v53_v20  ;;  %v58_v23 = vsub.s32 1, %v53_v20 }
   0xb   :  { %v950_v40 = vpack.c.bf16 %v311_v38, %v310_v37  ;;  %v32_v43 = vld [vmem:[%s1516_s0 + $0x30] sm:$0xff]  ;;  %v33_v44 = vld [vmem:[%s1516_s0 + $0x38] sm:$0xff]  ;;  %v34_v45 = vld [vmem:[%s1516_s0 + $0x40] sm:$0xff] }
   0xc   :  { %750 = vmatmul.mubr.msk.f32.vlgmr.msra.gmra.mrb[0].mxu0 %vm62_vm0, %v26_v13  ;;  %v35_v46 = vld [vmem:[%s1516_s0 + $0x48] sm:$0xff]  ;;  %v36_v47 = vld [vmem:[%s1516_s0 + $0x50] sm:$0xff]  ;;  %v37_v48 = vld [vmem:[%s1516_s0 + $0x58] sm:$0xff] }
   0xd   :  { %181 = vmatprep.mubr.f32.mxu0 %v1089_v3  ;;  %943 = vmatpush3.bf16.msra.mxu1 %v942_v28  ;;  %v38_v49 = vld [vmem:[%s1516_s0 + $0x60] sm:$0xff]  ;;  %v39_v50 = vld [vmem:[%s1516_s0 + $0x68] sm:$0xff]  ;;  %v40_v51 = vld [vmem:[%s1516_s0 + $0x70] sm:$0xff] }
   0xe   :  { %945 = vmatprep.subr.bf16.mxu1 %v944_v29  ;;  %v41_v52 = vld [vmem:[%s1516_s0 + $0x78] sm:$0xff]  ;;  %v328_v53 = vld [vmem:[%s1517_s3 + $0xc0] sm:$0xff]  ;;  %v329_v54 = vld [vmem:[%s1517_s3 + $0xc8] sm:$0xff] }
   0xf   :  { %v952_v55 = vpack.c.bf16 %v329_v54, %v328_v53  ;;  %v312_v56 = vld [vmem:[%s1517_s3 + $0x40] sm:$0xff]  ;;  %v313_v57 = vld [vmem:[%s1517_s3 + $0x48] sm:$0xff]  ;;  %v330_v59 = vld [vmem:[%s1517_s3 + $0xd0] sm:$0xff] }
  0x10   :  { %751 = vmatmul.mubr.msk.f32.gmra.mrb[2].mxu0 %vm62_vm0, %v27_v27  ;;  %v954_v58 = vpack.c.bf16 %v313_v57, %v312_v56  ;;  %v331_v60 = vld [vmem:[%s1517_s3 + $0xd8] sm:$0xff]  ;;  %v314_v62 = vld [vmem:[%s1517_s3 + $0x50] sm:$0xff]  ;;  %v332_v1 = vld [vmem:[%s1517_s3 + $0xe0] sm:$0xff] }
  0x11   :  { %187 = vmatprep.mubr.f32.mxu0 %v1089_v3  ;;  %947 = vmatpush3.bf16.msra.mxu1 %v946_v35  ;;  %v956_v61 = vpack.c.bf16 %v331_v60, %v330_v59  ;;  %v315_v63 = vld [vmem:[%s1517_s3 + $0x58] sm:$0xff]  ;;  %v333_v2 = vld [vmem:[%s1517_s3 + $0xe8] sm:$0xff]  ;;  %v316_v4 = vld [vmem:[%s1517_s3 + $0x60] sm:$0xff] }
  0x12   :  { %949 = vmatprep.subr.bf16.mxu1 %v948_v36  ;;  %v958_v0 = vpack.c.bf16 %v315_v63, %v314_v62  ;;  %v317_v5 = vld [vmem:[%s1517_s3 + $0x68] sm:$0xff]  ;;  %v334_v7 = vld [vmem:[%s1517_s3 + $0xf0] sm:$0xff]  ;;  %v335_v8 = vld [vmem:[%s1517_s3 + $0xf8] sm:$0xff] }
  0x13   :  { %v962_v6 = vpack.c.bf16 %v317_v5, %v316_v4  ;;  %v964_v9 = vpack.c.bf16 %v335_v8, %v334_v7  ;;  %v318_v10 = vld [vmem:[%s1517_s3 + $0x70] sm:$0xff]  ;;  %v319_v11 = vld [vmem:[%s1517_s3 + $0x78] sm:$0xff]  ;;  %v504_v13 = vld [vmem:[%s1518_s5] sm:$0xff] }
  0x14   :  { %752 = vmatmul.mubr.msk.f32.gmra.mrb[4].mxu0 %vm62_vm0, %v28_v34  ;;  %v966_v12 = vpack.c.bf16 %v319_v11, %v318_v10  ;;  %v505_v14 = vld [vmem:[%s1518_s5 + $0x8] sm:$0xff]  ;;  %v506_v15 = vld [vmem:[%s1518_s5 + $0x10] sm:$0xff]  ;;  %v507_v17 = vld [vmem:[%s1518_s5 + $0x18] sm:$0xff] }
  0x15   :  { %193 = vmatprep.mubr.f32.mxu0 %v1089_v3  ;;  %951 = vmatpush3.bf16.msra.mxu1 %v950_v40  ;;  %v968_v16 = vpack.c.bf16 %v505_v14, %v504_v13  ;;  %v972_v18 = vpack.c.bf16 %v507_v17, %v506_v15  ;;  %v50_v22 = vld [vmem:[%s1519_s2] sm:$0x3] }
  0x16   :  { %953 = vmatprep.subr.bf16.mxu1 %v952_v55  ;;  %v1345_v24 = vrot.slane %v50_v22, %v54_v21  ;;  %v1347_v25 = vrot.slane %v50_v22, %v58_v23 }
  0x17   :  { %969 = vmatprep.subr.bf16.mxu0 %v968_v16 }
  0x18   :  { %753 = vmatmul.mubr.msk.f32.gmra.mrb[6].mxu0 %vm62_vm0, %v29_v39 }
  0x19   :  { %199 = vmatprep.mubr.f32.mxu0 %v1089_v3  ;;  %955 = vmatpush3.bf16.msra.mxu1 %v954_v58 }
  0x1a   :  { %957 = vmatprep.subr.bf16.mxu1 %v956_v61  ;;  %971 = vmatpush3.bf16.msra.mxu0 %v968_v16 }
  0x1b   :  { %973 = vmatprep.subr.bf16.mxu0 %v972_v18 }
  0x1c   :  { %754 = vmatmul.mubr.msk.f32.gmra.mrb[8].mxu0 %vm62_vm0, %v30_v41 }
  0x1d   :  { %205 = vmatprep.mubr.f32.mxu0 %v1089_v3  ;;  %959 = vmatpush3.bf16.msra.mxu1 %v958_v0 }
  0x1e   :  { %975 = vmatpush3.bf16.msra.mxu0 %v972_v18 }
  0x20   :  { %755 = vmatmul.mubr.msk.f32.gmra.mrb[10].mxu0 %vm62_vm0, %v31_v42 }
  0x21   :  { %211 = vmatprep.mubr.f32.mxu0 %v1089_v3 }
  0x24   :  { %756 = vmatmul.mubr.msk.f32.gmra.mrb[12].mxu0 %vm62_vm0, %v32_v43 }
  0x25   :  { %217 = vmatprep.mubr.f32.mxu0 %v1089_v3 }
  0x28   :  { %757 = vmatmul.mubr.msk.f32.gmra.mrb[14].mxu0 %vm62_vm0, %v33_v44 }
  0x29   :  { %223 = vmatprep.mubr.f32.mxu0 %v1089_v3 }
  0x2c   :  { %758 = vmatmul.mubr.msk.f32.gmra.mrb[16].mxu0 %vm62_vm0, %v34_v45 }
  0x2d   :  { %229 = vmatprep.mubr.f32.mxu0 %v1089_v3 }
  0x30   :  { %759 = vmatmul.mubr.msk.f32.gmra.mrb[18].mxu0 %vm62_vm0, %v35_v46 }
  0x31   :  { %235 = vmatprep.mubr.f32.mxu0 %v1089_v3 }
  0x34   :  { %760 = vmatmul.mubr.msk.f32.gmra.mrb[20].mxu0 %vm62_vm0, %v36_v47 }
  0x35   :  { %241 = vmatprep.mubr.f32.mxu0 %v1089_v3 }
  0x38   :  { %761 = vmatmul.mubr.msk.f32.gmra.mrb[22].mxu0 %vm62_vm0, %v37_v48 }
  0x39   :  { %247 = vmatprep.mubr.f32.mxu0 %v1089_v3 }
  0x3c   :  { %762 = vmatmul.mubr.msk.f32.gmra.mrb[24].mxu0 %vm62_vm0, %v38_v49 }
  0x3d   :  { %253 = vmatprep.mubr.f32.mxu0 %v1089_v3 }
  0x40   :  { %763 = vmatmul.mubr.msk.f32.gmra.mrb[26].mxu0 %vm62_vm0, %v39_v50 }
  0x41   :  { %259 = vmatprep.mubr.f32.mxu0 %v1089_v3 }
  0x44   :  { %764 = vmatmul.mubr.msk.f32.gmra.mrb[28].mxu0 %vm62_vm0, %v40_v51 }
  0x45   :  { %265 = vmatprep.mubr.f32.mxu0 %v1089_v3  ;;  %v960_v3 = vpack.c.bf16 %v333_v2, %v332_v1 }
  0x47   :  { %961 = vmatprep.subr.bf16.mxu1 %v960_v3 }
  0x48   :  { %765 = vmatmul.mubr.msk.f32.gmra.mrb[30].mxu0 %vm62_vm0, %v41_v52  ;;  %963 = vmatpush3.bf16.msra.mxu1 %v962_v6 }
  0x49   :  { %965 = vmatprep.subr.bf16.mxu1 %v964_v9 }
  0x4c   :  { %967 = vmatpush3.bf16.msra.mxu1 %v966_v12 }
  0x4d   :  { %984 = vmatprep.subr.bf16.mxu1 %v968_v16 }
  0xdf   :  { %v177_v26 = vpop.f32.mrb[0].mxu0 }
  0xe0   :  { %v178_v27 = vadd.f32 %v177_v26, %v1345_v24  ;;  %v179_v28 = vpop.f32.mrb[1].mxu0 }
  0xe1   :  { %v180_v29 = vadd.f32 %v179_v28, %v1347_v25 }
  0xe3   :  { %993 = vtanh.f32 %v180_v29  ;;  %v183_v30 = vpop.f32.mrb[2].mxu0 }
  0xe4   :  { %995 = vtanh.f32 %v178_v27  ;;  %v184_v31 = vadd.f32 %v183_v30, %v1345_v24  ;;  %v185_v32 = vpop.f32.mrb[3].mxu0 }
  0xe5   :  { %v186_v33 = vadd.f32 %v185_v32, %v1347_v25 }
  0xe7   :  { %997 = vtanh.f32 %v186_v33  ;;  %v189_v34 = vpop.f32.mrb[4].mxu0 }
  0xe8   :  { %999 = vtanh.f32 %v184_v31  ;;  %v190_v35 = vadd.f32 %v189_v34, %v1345_v24  ;;  %v191_v36 = vpop.f32.mrb[5].mxu0 }
  0xe9   :  { %v192_v37 = vadd.f32 %v191_v36, %v1347_v25 }
  0xeb   :  { %1001 = vtanh.f32 %v192_v37  ;;  %v195_v38 = vpop.f32.mrb[6].mxu0 }
  0xec   :  { %1003 = vtanh.f32 %v190_v35  ;;  %v196_v39 = vadd.f32 %v195_v38, %v1345_v24  ;;  %v197_v40 = vpop.f32.mrb[7].mxu0 }
  0xed   :  { %v994_v41 = vpop.eup %993  ;;  %v198_v42 = vadd.f32 %v197_v40, %v1347_v25 }
  0xee   :  { %v996_v43 = vpop.eup %995  ;;  %407 = vmatprep.mubr.f32.mxu1 %v994_v41 }
  0xef   :  { %1005 = vtanh.f32 %v198_v42  ;;  %v201_v44 = vpop.f32.mrb[8].mxu0  ;;  %408 = vmatmul.mubr.f32.vlgmr.msra.gmra.mrb[0].mxu1 %v996_v43 }
  0xf0   :  { %1007 = vtanh.f32 %v196_v39  ;;  %v202_v45 = vadd.f32 %v201_v44, %v1345_v24  ;;  %v203_v46 = vpop.f32.mrb[9].mxu0  ;;  %988 = vmatpush3.bf16.msra.mxu1 %v968_v16 }
  0xf1   :  { %v998_v47 = vpop.eup %997  ;;  %v204_v48 = vadd.f32 %v203_v46, %v1347_v25  ;;  %985 = vmatprep.subr.bf16.mxu1 %v972_v18 }
  0xf2   :  { %v1000_v49 = vpop.eup %999  ;;  %412 = vmatprep.mubr.f32.mxu1 %v998_v47 }
  0xf3   :  { %1009 = vtanh.f32 %v204_v48  ;;  %v207_v50 = vpop.f32.mrb[10].mxu0  ;;  %413 = vmatmul.mubr.f32.gmra.mrb[2].mxu1 %v1000_v49 }
  0xf4   :  { %1011 = vtanh.f32 %v202_v45  ;;  %v208_v51 = vadd.f32 %v207_v50, %v1345_v24  ;;  %v209_v52 = vpop.f32.mrb[11].mxu0  ;;  %989 = vmatpush3.bf16.msra.mxu1 %v972_v18 }
  0xf5   :  { %v1002_v53 = vpop.eup %1001  ;;  %v210_v54 = vadd.f32 %v209_v52, %v1347_v25 }
  0xf6   :  { %v1004_v55 = vpop.eup %1003  ;;  %417 = vmatprep.mubr.f32.mxu1 %v1002_v53 }
  0xf7   :  { %1013 = vtanh.f32 %v210_v54  ;;  %v213_v56 = vpop.f32.mrb[12].mxu0  ;;  %418 = vmatmul.mubr.f32.gmra.mrb[4].mxu1 %v1004_v55 }
  0xf8   :  { %1015 = vtanh.f32 %v208_v51  ;;  %v214_v57 = vadd.f32 %v213_v56, %v1345_v24  ;;  %v215_v58 = vpop.f32.mrb[13].mxu0 }
  0xf9   :  { %v1006_v59 = vpop.eup %1005  ;;  %v216_v60 = vadd.f32 %v215_v58, %v1347_v25 }
  0xfa   :  { %v1008_v61 = vpop.eup %1007  ;;  %422 = vmatprep.mubr.f32.mxu1 %v1006_v59 }
  0xfb   :  { %1017 = vtanh.f32 %v216_v60  ;;  %v219_v62 = vpop.f32.mrb[14].mxu0  ;;  %423 = vmatmul.mubr.f32.gmra.mrb[6].mxu1 %v1008_v61  ;;  %v510_v61 = vld [vmem:[%s1518_s5 + $0x30] sm:$0xff] }
  0xfc   :  { %1019 = vtanh.f32 %v214_v57  ;;  %v220_v63 = vadd.f32 %v219_v62, %v1345_v24  ;;  %v221_v0 = vpop.f32.mrb[15].mxu0  ;;  %v511_v62 = vld [vmem:[%s1518_s5 + $0x38] sm:$0xff] }
  0xfd   :  { %v1010_v1 = vpop.eup %1009  ;;  %v222_v2 = vadd.f32 %v221_v0, %v1347_v25 }
  0xfe   :  { %v1012_v3 = vpop.eup %1011  ;;  %427 = vmatprep.mubr.f32.mxu1 %v1010_v1  ;;  %v1396_v1 = vld [vmem:[%s1520_s4] ss:$0 sm:$0xff] }
  0xff   :  { %1021 = vtanh.f32 %v222_v2  ;;  %v225_v4 = vpop.f32.mrb[16].mxu0  ;;  %428 = vmatmul.mubr.f32.gmra.mrb[8].mxu1 %v1012_v3 }
 0x100   :  { %1023 = vtanh.f32 %v220_v63  ;;  %v226_v5 = vadd.f32 %v225_v4, %v1345_v24  ;;  %v227_v6 = vpop.f32.mrb[17].mxu0  ;;  %v980_v63 = vpack.c.bf16 %v511_v62, %v510_v61 }
 0x101   :  { %v1014_v7 = vpop.eup %1013  ;;  %v228_v8 = vadd.f32 %v227_v6, %v1347_v25 }
 0x102   :  { %v1016_v9 = vpop.eup %1015  ;;  %432 = vmatprep.mubr.f32.mxu1 %v1014_v7 }
 0x103   :  { %1025 = vtanh.f32 %v228_v8  ;;  %v231_v10 = vpop.f32.mrb[18].mxu0  ;;  %433 = vmatmul.mubr.f32.gmra.mrb[10].mxu1 %v1016_v9 }
 0x104   :  { %1027 = vtanh.f32 %v226_v5  ;;  %v232_v11 = vadd.f32 %v231_v10, %v1345_v24  ;;  %v233_v12 = vpop.f32.mrb[19].mxu0 }
 0x105   :  { %v1018_v13 = vpop.eup %1017  ;;  %v234_v14 = vadd.f32 %v233_v12, %v1347_v25 }
 0x106   :  { %v1020_v15 = vpop.eup %1019  ;;  %437 = vmatprep.mubr.f32.mxu1 %v1018_v13 }
 0x107   :  { %1029 = vtanh.f32 %v234_v14  ;;  %v237_v16 = vpop.f32.mrb[20].mxu0  ;;  %438 = vmatmul.mubr.f32.gmra.mrb[12].mxu1 %v1020_v15 }
 0x108   :  { %1031 = vtanh.f32 %v232_v11  ;;  %v238_v17 = vadd.f32 %v237_v16, %v1345_v24  ;;  %v239_v18 = vpop.f32.mrb[21].mxu0 }
 0x109   :  { %v1022_v19 = vpop.eup %1021  ;;  %v240_v20 = vadd.f32 %v239_v18, %v1347_v25 }
 0x10a   :  { %v1024_v21 = vpop.eup %1023  ;;  %442 = vmatprep.mubr.f32.mxu1 %v1022_v19 }
 0x10b   :  { %1033 = vtanh.f32 %v240_v20  ;;  %v243_v22 = vpop.f32.mrb[22].mxu0  ;;  %443 = vmatmul.mubr.f32.gmra.mrb[14].mxu1 %v1024_v21 }
 0x10c   :  { %1035 = vtanh.f32 %v238_v17  ;;  %v244_v23 = vadd.f32 %v243_v22, %v1345_v24  ;;  %v245_v26 = vpop.f32.mrb[23].mxu0 }
 0x10d   :  { %v1026_v27 = vpop.eup %1025  ;;  %v246_v28 = vadd.f32 %v245_v26, %v1347_v25 }
 0x10e   :  { %v1028_v29 = vpop.eup %1027  ;;  %447 = vmatprep.mubr.f32.mxu1 %v1026_v27 }
 0x10f   :  { %1037 = vtanh.f32 %v246_v28  ;;  %v249_v30 = vpop.f32.mrb[24].mxu0  ;;  %448 = vmatmul.mubr.f32.gmra.mrb[16].mxu1 %v1028_v29 }
 0x110   :  { %1039 = vtanh.f32 %v244_v23  ;;  %v250_v31 = vadd.f32 %v249_v30, %v1345_v24  ;;  %v251_v32 = vpop.f32.mrb[25].mxu0 }
 0x111   :  { %v1030_v33 = vpop.eup %1029  ;;  %v252_v34 = vadd.f32 %v251_v32, %v1347_v25 }
 0x112   :  { %v1032_v35 = vpop.eup %1031  ;;  %452 = vmatprep.mubr.f32.mxu1 %v1030_v33 }
 0x113   :  { %1041 = vtanh.f32 %v252_v34  ;;  %v255_v36 = vpop.f32.mrb[26].mxu0  ;;  %453 = vmatmul.mubr.f32.gmra.mrb[18].mxu1 %v1032_v35 }
 0x114   :  { %1043 = vtanh.f32 %v250_v31  ;;  %v256_v37 = vadd.f32 %v255_v36, %v1345_v24  ;;  %v257_v38 = vpop.f32.mrb[27].mxu0 }
 0x115   :  { %v1034_v39 = vpop.eup %1033  ;;  %v258_v40 = vadd.f32 %v257_v38, %v1347_v25 }
 0x116   :  { %v1036_v41 = vpop.eup %1035  ;;  %457 = vmatprep.mubr.f32.mxu1 %v1034_v39 }
 0x117   :  { %1045 = vtanh.f32 %v258_v40  ;;  %v261_v42 = vpop.f32.mrb[28].mxu0  ;;  %458 = vmatmul.mubr.f32.gmra.mrb[20].mxu1 %v1036_v41 }
 0x118   :  { %1047 = vtanh.f32 %v256_v37  ;;  %v262_v43 = vadd.f32 %v261_v42, %v1345_v24  ;;  %v263_v44 = vpop.f32.mrb[29].mxu0 }
 0x119   :  { %v1038_v45 = vpop.eup %1037  ;;  %v264_v46 = vadd.f32 %v263_v44, %v1347_v25 }
 0x11a   :  { %v1040_v47 = vpop.eup %1039  ;;  %462 = vmatprep.mubr.f32.mxu1 %v1038_v45 }
 0x11b   :  { %1049 = vtanh.f32 %v264_v46  ;;  %v267_v48 = vpop.f32.mrb[30].mxu0  ;;  %463 = vmatmul.mubr.f32.gmra.mrb[22].mxu1 %v1040_v47 }
 0x11c   :  { %1051 = vtanh.f32 %v262_v43  ;;  %v268_v49 = vadd.f32 %v267_v48, %v1345_v24  ;;  %v269_v50 = vpop.f32.mrb[31].mxu0  ;;  %v508_v24 = vld [vmem:[%s1518_s5 + $0x20] sm:$0xff] }
 0x11d   :  { %v1042_v51 = vpop.eup %1041  ;;  %v270_v52 = vadd.f32 %v269_v50, %v1347_v25  ;;  %v509_v25 = vld [vmem:[%s1518_s5 + $0x28] sm:$0xff] }
 0x11e   :  { %v1044_v53 = vpop.eup %1043  ;;  %467 = vmatprep.mubr.f32.mxu1 %v1042_v51  ;;  %v976_v60 = vpack.c.bf16 %v509_v25, %v508_v24 }
 0x11f   :  { %1053 = vtanh.f32 %v270_v52  ;;  %468 = vmatmul.mubr.f32.gmra.mrb[24].mxu1 %v1044_v53 }
 0x120   :  { %1055 = vtanh.f32 %v268_v49  ;;  %977 = vmatprep.subr.bf16.mxu0 %v976_v60  ;;  %986 = vmatprep.subr.bf16.mxu1 %v976_v60 }
 0x121   :  { %v1046_v54 = vpop.eup %1045  ;;  %979 = vmatpush3.bf16.msra.mxu0 %v976_v60  ;;  %990 = vmatpush3.bf16.msra.mxu1 %v976_v60 }
 0x122   :  { %v1048_v55 = vpop.eup %1047  ;;  %472 = vmatprep.mubr.f32.mxu1 %v1046_v54  ;;  %981 = vmatprep.subr.bf16.mxu0 %v980_v63 }
 0x123   :  { %473 = vmatmul.mubr.f32.gmra.mrb[26].mxu1 %v1048_v55  ;;  %987 = vmatprep.subr.bf16.mxu1 %v980_v63 }
 0x125   :  { %v1050_v56 = vpop.eup %1049  ;;  %983 = vmatpush3.bf16.msra.mxu0 %v980_v63  ;;  %991 = vmatpush3.bf16.msra.mxu1 %v980_v63 }
 0x126   :  { %v1052_v57 = vpop.eup %1051  ;;  %477 = vmatprep.mubr.f32.mxu1 %v1050_v56 }
 0x127   :  { %478 = vmatmul.mubr.f32.gmra.mrb[28].mxu1 %v1052_v57 }
 0x129   :  { %v1054_v58 = vpop.eup %1053 }
 0x12a   :  { %v1056_v59 = vpop.eup %1055  ;;  %482 = vmatprep.mubr.f32.mxu1 %v1054_v58 }
 0x12b   :  { %483 = vmatmul.mubr.f32.gmra.mrb[30].mxu1 %v1056_v59 }
 0x1c2   :  { %v816_v0 = vpop.f32.mrb[0].mxu1 }
 0x1c3   :  { %v817_v2 = vpop.f32.mrb[1].mxu1 }
 0x1c4   :  { %v818_v3 = vadd.f32 %v817_v2, %v816_v0 }
 0x1c6   :  { %v410_v4 = vadd.f32 %v818_v3, %v1396_v1  ;;  %v819_v5 = vpop.f32.mrb[2].mxu1 }
 0x1c7   :  { %v820_v6 = vpop.f32.mrb[3].mxu1 }
 0x1c8   :  { %v488_v7 = vmax.f32 %v410_v4, 0.0  ;;  %v821_v8 = vadd.f32 %v820_v6, %v819_v5 }
 0x1ca   :  { %v415_v9 = vadd.f32 %v821_v8, %v1396_v1  ;;  %v822_v10 = vpop.f32.mrb[4].mxu1  ;;  %904 = vmatprep.mubr.msk.f32.mxu0 %vm519_vm1, %v488_v7 }
 0x1cb   :  { %v823_v11 = vpop.f32.mrb[5].mxu1 }
 0x1cc   :  { %v489_v12 = vmax.f32 %v415_v9, 0.0  ;;  %v824_v13 = vadd.f32 %v823_v11, %v822_v10 }
 0x1ce   :  { %v420_v14 = vadd.f32 %v824_v13, %v1396_v1  ;;  %v825_v15 = vpop.f32.mrb[6].mxu1  ;;  %905 = vmatmul.mubr.msk.f32.vlgmr.msra.gmra.mrb[32].mxu0 %vm519_vm1, %v489_v12 }
 0x1cf   :  { %v826_v16 = vpop.f32.mrb[7].mxu1 }
 0x1d0   :  { %v490_v17 = vmax.f32 %v420_v14, 0.0  ;;  %v827_v18 = vadd.f32 %v826_v16, %v825_v15 }
 0x1d2   :  { %v425_v19 = vadd.f32 %v827_v18, %v1396_v1  ;;  %v828_v20 = vpop.f32.mrb[8].mxu1  ;;  %907 = vmatprep.mubr.msk.f32.mxu0 %vm519_vm1, %v490_v17  ;;  %v1433_v18 = vld [vmem:[%s1521_s6] ss:$0 sm:$0xff] }
 0x1d3   :  { %v829_v21 = vpop.f32.mrb[9].mxu1 }
 0x1d4   :  { %v491_v22 = vmax.f32 %v425_v19, 0.0  ;;  %v830_v23 = vadd.f32 %v829_v21, %v828_v20 }
 0x1d6   :  { %v430_v26 = vadd.f32 %v830_v23, %v1396_v1  ;;  %v831_v27 = vpop.f32.mrb[10].mxu1  ;;  %908 = vmatmul.mubr.msk.f32.gmra.mrb[34].mxu0 %vm519_vm1, %v491_v22 }
 0x1d7   :  { %v832_v28 = vpop.f32.mrb[11].mxu1 }
 0x1d8   :  { %v492_v29 = vmax.f32 %v430_v26, 0.0  ;;  %v833_v30 = vadd.f32 %v832_v28, %v831_v27 }
 0x1da   :  { %v435_v31 = vadd.f32 %v833_v30, %v1396_v1  ;;  %v834_v32 = vpop.f32.mrb[12].mxu1  ;;  %910 = vmatprep.mubr.msk.f32.mxu0 %vm519_vm1, %v492_v29 }
 0x1db   :  { %v835_v33 = vpop.f32.mrb[13].mxu1 }
 0x1dc   :  { %v493_v34 = vmax.f32 %v435_v31, 0.0  ;;  %v836_v35 = vadd.f32 %v835_v33, %v834_v32 }
 0x1de   :  { %v440_v36 = vadd.f32 %v836_v35, %v1396_v1  ;;  %v837_v37 = vpop.f32.mrb[14].mxu1  ;;  %911 = vmatmul.mubr.msk.f32.gmra.mrb[36].mxu0 %vm519_vm1, %v493_v34 }
 0x1df   :  { %v838_v38 = vpop.f32.mrb[15].mxu1 }
 0x1e0   :  { %v494_v39 = vmax.f32 %v440_v36, 0.0  ;;  %v839_v40 = vadd.f32 %v838_v38, %v837_v37 }
 0x1e2   :  { %v445_v41 = vadd.f32 %v839_v40, %v1396_v1  ;;  %v840_v42 = vpop.f32.mrb[16].mxu1  ;;  %913 = vmatprep.mubr.msk.f32.mxu0 %vm519_vm1, %v494_v39 }
 0x1e3   :  { %v841_v43 = vpop.f32.mrb[17].mxu1 }
 0x1e4   :  { %v495_v44 = vmax.f32 %v445_v41, 0.0  ;;  %v842_v45 = vadd.f32 %v841_v43, %v840_v42 }
 0x1e6   :  { %v450_v46 = vadd.f32 %v842_v45, %v1396_v1  ;;  %v843_v47 = vpop.f32.mrb[18].mxu1  ;;  %914 = vmatmul.mubr.msk.f32.gmra.mrb[38].mxu0 %vm519_vm1, %v495_v44 }
 0x1e7   :  { %v844_v48 = vpop.f32.mrb[19].mxu1 }
 0x1e8   :  { %v496_v49 = vmax.f32 %v450_v46, 0.0  ;;  %v845_v50 = vadd.f32 %v844_v48, %v843_v47 }
 0x1ea   :  { %v455_v51 = vadd.f32 %v845_v50, %v1396_v1  ;;  %v846_v52 = vpop.f32.mrb[20].mxu1  ;;  %916 = vmatprep.mubr.msk.f32.mxu0 %vm519_vm1, %v496_v49 }
 0x1eb   :  { %v847_v53 = vpop.f32.mrb[21].mxu1 }
 0x1ec   :  { %v497_v54 = vmax.f32 %v455_v51, 0.0  ;;  %v848_v55 = vadd.f32 %v847_v53, %v846_v52 }
 0x1ee   :  { %v460_v56 = vadd.f32 %v848_v55, %v1396_v1  ;;  %v849_v57 = vpop.f32.mrb[22].mxu1  ;;  %917 = vmatmul.mubr.msk.f32.gmra.mrb[40].mxu0 %vm519_vm1, %v497_v54 }
 0x1ef   :  { %v850_v58 = vpop.f32.mrb[23].mxu1 }
 0x1f0   :  { %v498_v59 = vmax.f32 %v460_v56, 0.0  ;;  %v851_v24 = vadd.f32 %v850_v58, %v849_v57 }
 0x1f2   :  { %v465_v25 = vadd.f32 %v851_v24, %v1396_v1  ;;  %v852_v60 = vpop.f32.mrb[24].mxu1  ;;  %919 = vmatprep.mubr.msk.f32.mxu0 %vm519_vm1, %v498_v59 }
 0x1f3   :  { %v853_v61 = vpop.f32.mrb[25].mxu1 }
 0x1f4   :  { %v499_v62 = vmax.f32 %v465_v25, 0.0  ;;  %v854_v63 = vadd.f32 %v853_v61, %v852_v60 }
 0x1f6   :  { %v470_v0 = vadd.f32 %v854_v63, %v1396_v1  ;;  %v855_v2 = vpop.f32.mrb[26].mxu1  ;;  %920 = vmatmul.mubr.msk.f32.gmra.mrb[42].mxu0 %vm519_vm1, %v499_v62 }
 0x1f7   :  { %v856_v3 = vpop.f32.mrb[27].mxu1 }
 0x1f8   :  { %v500_v4 = vmax.f32 %v470_v0, 0.0  ;;  %v857_v5 = vadd.f32 %v856_v3, %v855_v2 }
 0x1fa   :  { %v475_v6 = vadd.f32 %v857_v5, %v1396_v1  ;;  %v858_v7 = vpop.f32.mrb[28].mxu1  ;;  %922 = vmatprep.mubr.msk.f32.mxu0 %vm519_vm1, %v500_v4 }
 0x1fb   :  { %v859_v8 = vpop.f32.mrb[29].mxu1 }
 0x1fc   :  { %v501_v9 = vmax.f32 %v475_v6, 0.0  ;;  %v860_v10 = vadd.f32 %v859_v8, %v858_v7 }
 0x1fe   :  { %v480_v11 = vadd.f32 %v860_v10, %v1396_v1  ;;  %v861_v12 = vpop.f32.mrb[30].mxu1  ;;  %923 = vmatmul.mubr.msk.f32.gmra.mrb[44].mxu0 %vm519_vm1, %v501_v9 }
 0x1ff   :  { %v862_v13 = vpop.f32.mrb[31].mxu1 }
 0x200   :  { %v502_v14 = vmax.f32 %v480_v11, 0.0  ;;  %v863_v15 = vadd.f32 %v862_v13, %v861_v12 }
 0x202   :  { %v485_v16 = vadd.f32 %v863_v15, %v1396_v1  ;;  %925 = vmatprep.mubr.msk.f32.mxu1 %vm519_vm1, %v502_v14 }
 0x204   :  { %v503_v17 = vmax.f32 %v485_v16, 0.0 }
 0x206   :  { %926 = vmatmul.mubr.msk.f32.vlgmr.msra.gmra.mrb[32].mxu1 %vm519_vm1, %v503_v17 }
 0x2a1   :  { %v906_v19 = vpop.f32.mrb[32].mxu0 }
 0x2a2   :  { %v640_v20 = vadd.f32 %v906_v19, %v1433_v18  ;;  %v634_v21 = vpop.f32.mrb[33].mxu0 }
 0x2a3   :  { %v635_v22 = vadd.f32 %v1433_v18, %v634_v21 }
 0x2a4   :  { %1057 = vtanh.f32 %v640_v20 }
 0x2a5   :  { %1059 = vtanh.f32 %v635_v22 }
 0x2a9   :  { %v909_v23 = vpop.f32.mrb[34].mxu0 }
 0x2aa   :  { %v650_v1 = vadd.f32 %v909_v23, %v1433_v18  ;;  %v644_v26 = vpop.f32.mrb[35].mxu0 }
 0x2ab   :  { %v645_v27 = vadd.f32 %v1433_v18, %v644_v26 }
 0x2ac   :  { %1061 = vtanh.f32 %v650_v1 }
 0x2ad   :  { %1063 = vtanh.f32 %v645_v27 }
 0x2ae   :  { %v1058_v28 = vpop.eup %1057 }
 0x2af   :  { %v1060_v29 = vpop.eup %1059  ;;  %731 = vst.msk [vmem:[%s1522_s7 + $0x8] sm:$0xff] %vm729_vm2, %v1058_v28 }
 0x2b0   :  { %730 = vst.msk [vmem:[%s1522_s7] sm:$0xff] %vm729_vm2, %v1060_v29 }
 0x2b1   :  { %v912_v30 = vpop.f32.mrb[36].mxu0 }
 0x2b2   :  { %v660_v31 = vadd.f32 %v912_v30, %v1433_v18  ;;  %v654_v32 = vpop.f32.mrb[37].mxu0 }
 0x2b3   :  { %v655_v33 = vadd.f32 %v1433_v18, %v654_v32 }
 0x2b4   :  { %1065 = vtanh.f32 %v660_v31 }
 0x2b5   :  { %1067 = vtanh.f32 %v655_v33 }
 0x2b6   :  { %v1062_v34 = vpop.eup %1061 }
 0x2b7   :  { %v1064_v35 = vpop.eup %1063  ;;  %733 = vst.msk [vmem:[%s1522_s7 + $0x18] sm:$0xff] %vm729_vm2, %v1062_v34 }
 0x2b8   :  { %732 = vst.msk [vmem:[%s1522_s7 + $0x10] sm:$0xff] %vm729_vm2, %v1064_v35 }
 0x2b9   :  { %v915_v36 = vpop.f32.mrb[38].mxu0 }
 0x2ba   :  { %v670_v37 = vadd.f32 %v915_v36, %v1433_v18  ;;  %v664_v38 = vpop.f32.mrb[39].mxu0 }
 0x2bb   :  { %v665_v39 = vadd.f32 %v1433_v18, %v664_v38 }
 0x2bc   :  { %1069 = vtanh.f32 %v670_v37 }
 0x2bd   :  { %1071 = vtanh.f32 %v665_v39 }
 0x2be   :  { %v1066_v40 = vpop.eup %1065 }
 0x2bf   :  { %v1068_v41 = vpop.eup %1067  ;;  %735 = vst.msk [vmem:[%s1522_s7 + $0x28] sm:$0xff] %vm729_vm2, %v1066_v40 }
 0x2c0   :  { %734 = vst.msk [vmem:[%s1522_s7 + $0x20] sm:$0xff] %vm729_vm2, %v1068_v41 }
 0x2c1   :  { %v918_v42 = vpop.f32.mrb[40].mxu0 }
 0x2c2   :  { %v680_v43 = vadd.f32 %v918_v42, %v1433_v18  ;;  %v674_v44 = vpop.f32.mrb[41].mxu0 }
 0x2c3   :  { %v675_v45 = vadd.f32 %v1433_v18, %v674_v44 }
 0x2c4   :  { %1073 = vtanh.f32 %v680_v43 }
 0x2c5   :  { %1075 = vtanh.f32 %v675_v45 }
 0x2c6   :  { %v1070_v46 = vpop.eup %1069 }
 0x2c7   :  { %v1072_v47 = vpop.eup %1071  ;;  %737 = vst.msk [vmem:[%s1522_s7 + $0x38] sm:$0xff] %vm729_vm2, %v1070_v46 }
 0x2c8   :  { %736 = vst.msk [vmem:[%s1522_s7 + $0x30] sm:$0xff] %vm729_vm2, %v1072_v47 }
 0x2c9   :  { %v921_v48 = vpop.f32.mrb[42].mxu0 }
 0x2ca   :  { %v690_v49 = vadd.f32 %v921_v48, %v1433_v18  ;;  %v684_v50 = vpop.f32.mrb[43].mxu0 }
 0x2cb   :  { %v685_v51 = vadd.f32 %v1433_v18, %v684_v50 }
 0x2cc   :  { %1077 = vtanh.f32 %v690_v49 }
 0x2cd   :  { %1079 = vtanh.f32 %v685_v51 }
 0x2ce   :  { %v1074_v52 = vpop.eup %1073 }
 0x2cf   :  { %v1076_v53 = vpop.eup %1075  ;;  %739 = vst.msk [vmem:[%s1522_s7 + $0x48] sm:$0xff] %vm729_vm2, %v1074_v52 }
 0x2d0   :  { %738 = vst.msk [vmem:[%s1522_s7 + $0x40] sm:$0xff] %vm729_vm2, %v1076_v53 }
 0x2d1   :  { %v924_v54 = vpop.f32.mrb[44].mxu0 }
 0x2d2   :  { %v700_v55 = vadd.f32 %v924_v54, %v1433_v18  ;;  %v694_v56 = vpop.f32.mrb[45].mxu0 }
 0x2d3   :  { %v695_v57 = vadd.f32 %v1433_v18, %v694_v56 }
 0x2d4   :  { %1081 = vtanh.f32 %v700_v55 }
 0x2d5   :  { %1083 = vtanh.f32 %v695_v57 }
 0x2d6   :  { %v1078_v58 = vpop.eup %1077 }
 0x2d7   :  { %v1080_v59 = vpop.eup %1079  ;;  %741 = vst.msk [vmem:[%s1522_s7 + $0x58] sm:$0xff] %vm729_vm2, %v1078_v58 }
 0x2d8   :  { %740 = vst.msk [vmem:[%s1522_s7 + $0x50] sm:$0xff] %vm729_vm2, %v1080_v59 }
 0x2d9   :  { %v927_v24 = vpop.f32.mrb[32].mxu1 }
 0x2da   :  { %v710_v25 = vadd.f32 %v927_v24, %v1433_v18  ;;  %v704_v60 = vpop.f32.mrb[33].mxu1 }
 0x2db   :  { %v705_v61 = vadd.f32 %v1433_v18, %v704_v60 }
 0x2dc   :  { %1085 = vtanh.f32 %v710_v25 }
 0x2dd   :  { %1087 = vtanh.f32 %v705_v61 }
 0x2de   :  { %v1082_v62 = vpop.eup %1081 }
 0x2df   :  { %v1084_v63 = vpop.eup %1083  ;;  %743 = vst.msk [vmem:[%s1522_s7 + $0x68] sm:$0xff] %vm729_vm2, %v1082_v62 }
 0x2e0   :  { %742 = vst.msk [vmem:[%s1522_s7 + $0x60] sm:$0xff] %vm729_vm2, %v1084_v63 }
 0x2e6   :  { %v1086_v0 = vpop.eup %1085 }
 0x2e7   :  { %v1088_v2 = vpop.eup %1087  ;;  %745 = vst.msk [vmem:[%s1522_s7 + $0x78] sm:$0xff] %vm729_vm2, %v1086_v0 }
 0x2e8   :  { %744 = vst.msk [vmem:[%s1522_s7 + $0x70] sm:$0xff] %vm729_vm2, %v1088_v2 }

</bundles_post_ra>
